<compile_context>
chip_gen: v5e
topology: v5e:2x2
jax: 0.10.0
libtpu: 0.0.40
codegen_flags: <defaults>
</compile_context>

<pallas_src>
import functools

import jax
import jax.numpy as jnp
import numpy as np
from jax.experimental import pallas as pl
from jax.experimental.pallas import tpu as pltpu


def _ghmc_kernel(acc_in_ref, logits_ref, tgt_ref,        # inputs
                 loss_ref, acc_out_ref,                   # outputs
                 cnt_ref, bce_ref,                        # scratch
                 *, nbins, momentum, loss_weight, tot):
    step = pl.program_id(0)
    last = pl.num_programs(0) - 1
    C, TB = logits_ref.shape

    @pl.when(step == 0)
    def _init():
        cnt_ref[...] = jnp.zeros_like(cnt_ref)
        bce_ref[...] = jnp.zeros_like(bce_ref)
        acc_out_ref[...] = acc_in_ref[...]
        loss_ref[0, 0] = 0.0

    # ---- streaming pass over this batch tile (lane-dense [C, TB]) ----------
    x = logits_ref[...].astype(jnp.float32)                    # [C, TB]
    tgt = tgt_ref[...]                                         # [1, TB] int32
    valid = jnp.broadcast_to(tgt >= 0, (C, TB))                # padded cols -> False
    row = jax.lax.broadcasted_iota(jnp.int32, (C, TB), 0)
    t = (row == tgt).astype(jnp.float32)                       # one-hot target

    # fused sigmoid / BCE-with-logits: one exp, reused for p and softplus
    e = jnp.exp(-jnp.abs(x))
    inv1pe = 1.0 / (1.0 + e)
    p = jnp.where(x >= 0, inv1pe, e * inv1pe)                  # sigmoid(x)
    g = jnp.abs(p - t)                                         # gradient norm
    bce = jnp.maximum(x, 0.0) - x * t + jnp.log1p(e)           # per-element BCE

    # uniform edges -> bin index = clamp(floor(g*bins), bins-1).  g == 1.0
    # lands in the top bin, matching the reference's edges[-1] += 1e-6.
    bin_id = jnp.minimum(jnp.floor(g * nbins).astype(jnp.int32), nbins - 1)
    bin_id = jnp.where(valid, bin_id, -1)                      # exclude padding

    for i in range(nbins):                                     # static unrolled
        mf = (bin_id == i).astype(jnp.float32)
        cnt_ref[pl.ds(i, 1), :] += jnp.sum(mf, axis=0, keepdims=True)
        bce_ref[pl.ds(i, 1), :] += jnp.sum(mf * bce, axis=0, keepdims=True)

    # ---- epilogue: 2*bins scalars -> weights, EMA update, loss --------------
    @pl.when(step == last)
    def _finalize():
        cnt = jnp.sum(cnt_ref[...], axis=1, keepdims=True)      # [bins, 1]
        bce_tot = jnp.sum(bce_ref[...], axis=1, keepdims=True)  # [bins, 1]
        acc_in = acc_in_ref[...]                                # [bins, 1]
        has = cnt > 0.0
        if momentum > 0:
            acc_new = jnp.where(has,
                                momentum * acc_in + (1.0 - momentum) * cnt,
                                acc_in)
            w = jnp.where(has, tot / jnp.maximum(acc_new, 1e-12), 0.0)
        else:
            acc_new = acc_in
            w = jnp.where(has, tot / jnp.maximum(cnt, 1.0), 0.0)
        n = jnp.sum(has.astype(jnp.float32))
        w = w / jnp.maximum(n, 1.0)            # weights /= n  (no-op if n == 0)
        acc_out_ref[...] = acc_new
        loss_ref[0, 0] = jnp.sum(bce_tot * w) / tot * loss_weight


def _default_block_b():
    """Batch rows per tile (lane axis). Larger on 128-MiB-VMEM parts (v5e/v6e),
    smaller on v7x (64 MiB)."""
    try:
        vmem = pltpu.get_tpu_info().vmem_capacity_bytes
    except Exception:
        vmem = 64 * 1024 * 1024
    return 8192 if vmem >= (100 << 20) else 2048


def ghmc_classification_loss(logits, target_indices, acc_sum,
                             bins=10, momentum=0.1, loss_weight=1.0,
                             block_b=None):
    """GHMCClassificationLoss.forward as a single Pallas TPU kernel.

    Returns (loss, new_acc_sum); the module's in-place EMA buffer self.acc_sum
    is kept functional by taking it as input and returning the updated value.
    """
    B, C = logits.shape
    tot = float(max(B * C, 1.0))
    if block_b is None:
        block_b = _default_block_b()

    # lane-dense layout: [C, B_pad], batch on the 128-lane axis.
    b_pad = -(-B // 128) * 128
    tb = min(block_b, b_pad)
    b_pad = -(-b_pad // tb) * tb
    grid = (b_pad // tb,)

    logits_t = jnp.transpose(logits, (1, 0))                    # [C, B], native dtype
    tgt = target_indices.astype(jnp.int32).reshape(1, B)
    if b_pad != B:
        logits_t = jnp.pad(logits_t, ((0, 0), (0, b_pad - B)))
        tgt = jnp.pad(tgt, ((0, 0), (0, b_pad - B)), constant_values=-1)
    acc2d = acc_sum.astype(jnp.float32).reshape(bins, 1)

    kernel = functools.partial(_ghmc_kernel, nbins=int(bins),
                               momentum=float(momentum),
                               loss_weight=float(loss_weight), tot=tot)

    loss, acc_new = pl.pallas_call(
        kernel,
        out_shape=(jax.ShapeDtypeStruct((1, 1), jnp.float32),
                   jax.ShapeDtypeStruct((bins, 1), jnp.float32)),
        grid=grid,
        in_specs=[
            pl.BlockSpec((bins, 1), lambda i: (0, 0)),      # acc_sum (resident)
            pl.BlockSpec((C, tb), lambda i: (0, i)),        # logits tile [C, TB]
            pl.BlockSpec((1, tb), lambda i: (0, i)),        # target indices tile
        ],
        out_specs=(
            pl.BlockSpec(memory_space=pltpu.MemorySpace.SMEM),  # scalar loss
            pl.BlockSpec((bins, 1), lambda i: (0, 0)),          # updated acc_sum
        ),
        scratch_shapes=[pltpu.VMEM((bins, tb), jnp.float32),    # per-bin counts
                        pltpu.VMEM((bins, tb), jnp.float32)],   # per-bin bce sums
        compiler_params=pltpu.CompilerParams(
            dimension_semantics=("arbitrary",),     # sequential reduction grid
            vmem_limit_bytes=32 * 1024 * 1024),
        # TODO(synk): on v7x (2 TensorCores) split the reduction across cores
        # (per-core partial bin counts / bce sums combined in an epilogue).
    )(acc2d, logits_t, tgt)
    return loss[0, 0], acc_new[:, 0]


def _reference(logits, target_indices, acc_sum, bins=10, momentum=0.1,
               loss_weight=1.0):
    """Pure numpy reference mirroring the PyTorch module."""
    logits = np.asarray(logits, np.float32)
    tgt = np.asarray(target_indices, np.int64)
    acc = np.asarray(acc_sum, np.float32).copy()
    B, C = logits.shape
    edges = np.arange(bins + 1, dtype=np.float32) / bins
    edges[-1] += 1e-6
    target = np.eye(C, dtype=np.float32)[tgt]
    tot = max(float(B * C), 1.0)
    g = np.abs(1.0 / (1.0 + np.exp(-logits)) - target)
    weights = np.zeros_like(logits)
    n = 0
    for i in range(bins):
        inds = (g >= edges[i]) & (g < edges[i + 1])
        num = int(inds.sum())
        if num > 0:
            if momentum > 0:
                acc[i] = momentum * acc[i] + (1 - momentum) * num
                weights[inds] = tot / acc[i]
            else:
                weights[inds] = tot / num
            n += 1
    if n > 0:
        weights = weights / n
    bce = (np.maximum(logits, 0) - logits * target
           + np.log1p(np.exp(-np.abs(logits))))
    return float(np.sum(bce * weights) / tot * loss_weight), acc


if __name__ == "__main__":
    BINS, MOMENTUM, LOSS_WEIGHT = 10, 0.1, 1.0
    B, C = 8, 16

    key = jax.random.PRNGKey(0)
    k1, k2 = jax.random.split(key)
    logits = jax.random.normal(k1, (B, C), dtype=jnp.float32) * 2.0
    target_indices = jax.random.randint(k2, (B,), 0, C, dtype=jnp.int32)
    acc_sum = jnp.zeros((BINS,), jnp.float32)   # fresh module state (momentum>0)

    loss, acc_new = ghmc_classification_loss(logits, target_indices, acc_sum,
                                             bins=BINS, momentum=MOMENTUM,
                                             loss_weight=LOSS_WEIGHT)
    loss = jax.block_until_ready(loss)
    acc_new = jax.block_until_ready(acc_new)

    ref_loss, ref_acc = _reference(np.array(logits), np.array(target_indices),
                                   np.array(acc_sum), BINS, MOMENTUM, LOSS_WEIGHT)
    assert abs(float(loss) - ref_loss) < 1e-3 * max(1.0, abs(ref_loss)), \
        (float(loss), ref_loss)
    assert np.allclose(np.array(acc_new), ref_acc, rtol=1e-5, atol=1e-3), \
        (np.array(acc_new), ref_acc)

    # second forward pass to exercise the EMA acc_sum state-update path
    loss2, acc_new2 = ghmc_classification_loss(logits, target_indices, acc_new,
                                               bins=BINS, momentum=MOMENTUM,
                                               loss_weight=LOSS_WEIGHT)
    loss2 = jax.block_until_ready(loss2)
    ref_loss2, ref_acc2 = _reference(np.array(logits), np.array(target_indices),
                                     ref_acc, BINS, MOMENTUM, LOSS_WEIGHT)
    assert abs(float(loss2) - ref_loss2) < 1e-3 * max(1.0, abs(ref_loss2)), \
        (float(loss2), ref_loss2)
    assert np.allclose(np.array(acc_new2), ref_acc2, rtol=1e-5, atol=1e-3)

    print("KERNEL_OK")
</pallas_src>

<mosaic_0001>
module attributes {stable_mosaic.version = 11 : i64} {
  func.func @_ghmc_kernel(%arg0: i32, %arg1: memref<10x1xf32, #tpu.memory_space<vmem>>, %arg2: memref<16x128xf32, #tpu.memory_space<vmem>>, %arg3: memref<1x128xi32, #tpu.memory_space<vmem>>, %arg4: memref<1x1xf32, #tpu.memory_space<smem>>, %arg5: memref<10x1xf32, #tpu.memory_space<vmem>>, %arg6: memref<10x128xf32, #tpu.memory_space<vmem>>, %arg7: memref<10x128xf32, #tpu.memory_space<vmem>>) attributes {dimension_semantics = [#tpu.dimension_semantics<arbitrary>], iteration_bounds = array<i64: 1>, scalar_prefetch = 0 : i64, scratch_operands = 2 : i64, tpu.core_type = #tpu.core_type<tc>, window_params = [{pipeline_mode = #tpu.pipeline_mode<synchronous>, transform_indices = @transform_0, window_bounds = array<i64: 10, 1>}, {transform_indices = @transform_1, window_bounds = array<i64: 16, 128>}, {transform_indices = @transform_2, window_bounds = array<i64: 1, 128>}, {transform_indices = @transform_3, window_bounds = array<i64: 1, 1>}, {pipeline_mode = #tpu.pipeline_mode<synchronous>, transform_indices = @transform_4, window_bounds = array<i64: 10, 1>}]} {
    %c0_i32 = arith.constant 0 : i32
    %0 = arith.cmpi eq, %arg0, %c0_i32 : i32
    %1 = arith.extui %0 : i1 to i32
    %c0_i32_0 = arith.constant 0 : i32
    %2 = arith.cmpi ne, %1, %c0_i32_0 : i32
    scf.if %2 {
      %cst_105 = arith.constant 0.000000e+00 : f32
      %195 = vector.broadcast %cst_105 : f32 to vector<10x128xf32>
      %c0_106 = arith.constant 0 : index
      %c0_107 = arith.constant 0 : index
      %196 = vector.load %arg6[%c0_106, %c0_107] : memref<10x128xf32, #tpu.memory_space<vmem>>, vector<10x128xf32>
      tpu.vector_store %arg6[%c0_106, %c0_107], %195 {strides = array<i32>} : memref<10x128xf32, #tpu.memory_space<vmem>>, vector<10x128xf32>,
      %cst_108 = arith.constant 0.000000e+00 : f32
      %197 = vector.broadcast %cst_108 : f32 to vector<10x128xf32>
      %c0_109 = arith.constant 0 : index
      %c0_110 = arith.constant 0 : index
      %198 = vector.load %arg7[%c0_109, %c0_110] : memref<10x128xf32, #tpu.memory_space<vmem>>, vector<10x128xf32>
      tpu.vector_store %arg7[%c0_109, %c0_110], %197 {strides = array<i32>} : memref<10x128xf32, #tpu.memory_space<vmem>>, vector<10x128xf32>,
      %c0_111 = arith.constant 0 : index
      %c0_112 = arith.constant 0 : index
      %199 = vector.load %arg1[%c0_111, %c0_112] : memref<10x1xf32, #tpu.memory_space<vmem>>, vector<10x1xf32>
      %c0_113 = arith.constant 0 : index
      %c0_114 = arith.constant 0 : index
      %200 = vector.load %arg5[%c0_113, %c0_114] : memref<10x1xf32, #tpu.memory_space<vmem>>, vector<10x1xf32>
      tpu.vector_store %arg5[%c0_113, %c0_114], %199 {strides = array<i32>} : memref<10x1xf32, #tpu.memory_space<vmem>>, vector<10x1xf32>,
      %cst_115 = arith.constant 0.000000e+00 : f32
      %c0_116 = arith.constant 0 : index
      %c0_117 = arith.constant 0 : index
      %201 = memref.load %arg4[%c0_116, %c0_117] : memref<1x1xf32, #tpu.memory_space<smem>>
      memref.store %cst_115, %arg4[%c0_116, %c0_117] : memref<1x1xf32, #tpu.memory_space<smem>>
    } else {
    }
    %c0 = arith.constant 0 : index
    %c0_1 = arith.constant 0 : index
    %3 = vector.load %arg2[%c0, %c0_1] : memref<16x128xf32, #tpu.memory_space<vmem>>, vector<16x128xf32>
    %c0_2 = arith.constant 0 : index
    %c0_3 = arith.constant 0 : index
    %4 = vector.load %arg3[%c0_2, %c0_3] : memref<1x128xi32, #tpu.memory_space<vmem>>, vector<1x128xi32>
    %c0_i32_4 = arith.constant 0 : i32
    %5 = vector.broadcast %c0_i32_4 : i32 to vector<1x128xi32>
    %6 = arith.cmpi sge, %4, %5 : vector<1x128xi32>
    %7 = vector.shape_cast %6 : vector<1x128xi1> to vector<1x128xi1>
    %8 = vector.broadcast %7 : vector<1x128xi1> to vector<16x128xi1>
    %9 = tpu.iota {dimensions = array<i32: 0>} : vector<16x128xi32>
    %10 = vector.broadcast %4 : vector<1x128xi32> to vector<16x128xi32>
    %11 = arith.cmpi eq, %9, %10 : vector<16x128xi32>
    %12 = arith.extui %11 : vector<16x128xi1> to vector<16x128xi32>
    %13 = arith.sitofp %12 : vector<16x128xi32> to vector<16x128xf32>
    %14 = math.absf %3 : vector<16x128xf32>
    %cst = arith.constant 0.000000e+00 : f32
    %15 = vector.broadcast %cst : f32 to vector<16x128xf32>
    %16 = arith.subf %15, %14 : vector<16x128xf32>
    %17 = math.exp %16 : vector<16x128xf32>
    %cst_5 = arith.constant 1.000000e+00 : f32
    %18 = vector.broadcast %cst_5 : f32 to vector<16x128xf32>
    %19 = arith.addf %18, %17 : vector<16x128xf32>
    %cst_6 = arith.constant 1.000000e+00 : f32
    %20 = vector.broadcast %cst_6 : f32 to vector<16x128xf32>
    %21 = arith.divf %20, %19 : vector<16x128xf32>
    %cst_7 = arith.constant 0.000000e+00 : f32
    %22 = vector.broadcast %cst_7 : f32 to vector<16x128xf32>
    %23 = arith.cmpf oge, %3, %22 : vector<16x128xf32>
    %24 = arith.mulf %17, %21 : vector<16x128xf32>
    %25 = arith.select %23, %21, %24 : vector<16x128xi1>, vector<16x128xf32>
    %26 = arith.subf %25, %13 : vector<16x128xf32>
    %27 = math.absf %26 : vector<16x128xf32>
    %cst_8 = arith.constant 0.000000e+00 : f32
    %28 = vector.broadcast %cst_8 : f32 to vector<16x128xf32>
    %29 = arith.maximumf %3, %28 : vector<16x128xf32>
    %30 = arith.mulf %3, %13 : vector<16x128xf32>
    %31 = arith.subf %29, %30 : vector<16x128xf32>
    %32 = math.log1p %17 : vector<16x128xf32>
    %33 = arith.addf %31, %32 : vector<16x128xf32>
    %cst_9 = arith.constant 1.000000e+01 : f32
    %34 = vector.broadcast %cst_9 : f32 to vector<16x128xf32>
    %35 = arith.mulf %27, %34 : vector<16x128xf32>
    %36 = math.floor %35 : vector<16x128xf32>
    %37 = arith.fptosi %36 : vector<16x128xf32> to vector<16x128xi32>
    %c9_i32 = arith.constant 9 : i32
    %38 = vector.broadcast %c9_i32 : i32 to vector<16x128xi32>
    %39 = arith.minsi %37, %38 : vector<16x128xi32>
    %c-1_i32 = arith.constant -1 : i32
    %40 = vector.broadcast %c-1_i32 : i32 to vector<16x128xi32>
    %41 = arith.select %8, %39, %40 : vector<16x128xi1>, vector<16x128xi32>
    %c0_i32_10 = arith.constant 0 : i32
    %42 = vector.broadcast %c0_i32_10 : i32 to vector<16x128xi32>
    %43 = arith.cmpi eq, %41, %42 : vector<16x128xi32>
    %44 = arith.extui %43 : vector<16x128xi1> to vector<16x128xi32>
    %45 = arith.sitofp %44 : vector<16x128xi32> to vector<16x128xf32>
    %c0_11 = arith.constant 0 : index
    %c0_12 = arith.constant 0 : index
    %46 = vector.load %arg6[%c0_11, %c0_12] : memref<10x128xf32, #tpu.memory_space<vmem>>, vector<1x128xf32>
    %cst_13 = arith.constant dense<0.000000e+00> : vector<128xf32>
    %47 = vector.multi_reduction <add>, %45, %cst_13 [0] : vector<16x128xf32> to vector<128xf32>
    %48 = vector.shape_cast %47 : vector<128xf32> to vector<1x128xf32>
    %49 = arith.addf %46, %48 : vector<1x128xf32>
    %c0_14 = arith.constant 0 : index
    %c0_15 = arith.constant 0 : index
    %50 = vector.load %arg6[%c0_14, %c0_15] : memref<10x128xf32, #tpu.memory_space<vmem>>, vector<1x128xf32>
    tpu.vector_store %arg6[%c0_14, %c0_15], %49 {strides = array<i32>} : memref<10x128xf32, #tpu.memory_space<vmem>>, vector<1x128xf32>,
    %c0_16 = arith.constant 0 : index
    %c0_17 = arith.constant 0 : index
    %51 = vector.load %arg7[%c0_16, %c0_17] : memref<10x128xf32, #tpu.memory_space<vmem>>, vector<1x128xf32>
    %52 = arith.mulf %45, %33 : vector<16x128xf32>
    %cst_18 = arith.constant dense<0.000000e+00> : vector<128xf32>
    %53 = vector.multi_reduction <add>, %52, %cst_18 [0] : vector<16x128xf32> to vector<128xf32>
    %54 = vector.shape_cast %53 : vector<128xf32> to vector<1x128xf32>
    %55 = arith.addf %51, %54 : vector<1x128xf32>
    %c0_19 = arith.constant 0 : index
    %c0_20 = arith.constant 0 : index
    %56 = vector.load %arg7[%c0_19, %c0_20] : memref<10x128xf32, #tpu.memory_space<vmem>>, vector<1x128xf32>
    tpu.vector_store %arg7[%c0_19, %c0_20], %55 {strides = array<i32>} : memref<10x128xf32, #tpu.memory_space<vmem>>, vector<1x128xf32>,
    %c1_i32 = arith.constant 1 : i32
    %57 = vector.broadcast %c1_i32 : i32 to vector<16x128xi32>
    %58 = arith.cmpi eq, %41, %57 : vector<16x128xi32>
    %59 = arith.extui %58 : vector<16x128xi1> to vector<16x128xi32>
    %60 = arith.sitofp %59 : vector<16x128xi32> to vector<16x128xf32>
    %c1 = arith.constant 1 : index
    %c0_21 = arith.constant 0 : index
    %61 = vector.load %arg6[%c1, %c0_21] : memref<10x128xf32, #tpu.memory_space<vmem>>, vector<1x128xf32>
    %cst_22 = arith.constant dense<0.000000e+00> : vector<128xf32>
    %62 = vector.multi_reduction <add>, %60, %cst_22 [0] : vector<16x128xf32> to vector<128xf32>
    %63 = vector.shape_cast %62 : vector<128xf32> to vector<1x128xf32>
    %64 = arith.addf %61, %63 : vector<1x128xf32>
    %c1_23 = arith.constant 1 : index
    %c0_24 = arith.constant 0 : index
    %65 = vector.load %arg6[%c1_23, %c0_24] : memref<10x128xf32, #tpu.memory_space<vmem>>, vector<1x128xf32>
    tpu.vector_store %arg6[%c1_23, %c0_24], %64 {strides = array<i32>} : memref<10x128xf32, #tpu.memory_space<vmem>>, vector<1x128xf32>,
    %c1_25 = arith.constant 1 : index
    %c0_26 = arith.constant 0 : index
    %66 = vector.load %arg7[%c1_25, %c0_26] : memref<10x128xf32, #tpu.memory_space<vmem>>, vector<1x128xf32>
    %67 = arith.mulf %60, %33 : vector<16x128xf32>
    %cst_27 = arith.constant dense<0.000000e+00> : vector<128xf32>
    %68 = vector.multi_reduction <add>, %67, %cst_27 [0] : vector<16x128xf32> to vector<128xf32>
    %69 = vector.shape_cast %68 : vector<128xf32> to vector<1x128xf32>
    %70 = arith.addf %66, %69 : vector<1x128xf32>
    %c1_28 = arith.constant 1 : index
    %c0_29 = arith.constant 0 : index
    %71 = vector.load %arg7[%c1_28, %c0_29] : memref<10x128xf32, #tpu.memory_space<vmem>>, vector<1x128xf32>
    tpu.vector_store %arg7[%c1_28, %c0_29], %70 {strides = array<i32>} : memref<10x128xf32, #tpu.memory_space<vmem>>, vector<1x128xf32>,
    %c2_i32 = arith.constant 2 : i32
    %72 = vector.broadcast %c2_i32 : i32 to vector<16x128xi32>
    %73 = arith.cmpi eq, %41, %72 : vector<16x128xi32>
    %74 = arith.extui %73 : vector<16x128xi1> to vector<16x128xi32>
    %75 = arith.sitofp %74 : vector<16x128xi32> to vector<16x128xf32>
    %c2 = arith.constant 2 : index
    %c0_30 = arith.constant 0 : index
    %76 = vector.load %arg6[%c2, %c0_30] : memref<10x128xf32, #tpu.memory_space<vmem>>, vector<1x128xf32>
    %cst_31 = arith.constant dense<0.000000e+00> : vector<128xf32>
    %77 = vector.multi_reduction <add>, %75, %cst_31 [0] : vector<16x128xf32> to vector<128xf32>
    %78 = vector.shape_cast %77 : vector<128xf32> to vector<1x128xf32>
    %79 = arith.addf %76, %78 : vector<1x128xf32>
    %c2_32 = arith.constant 2 : index
    %c0_33 = arith.constant 0 : index
    %80 = vector.load %arg6[%c2_32, %c0_33] : memref<10x128xf32, #tpu.memory_space<vmem>>, vector<1x128xf32>
    tpu.vector_store %arg6[%c2_32, %c0_33], %79 {strides = array<i32>} : memref<10x128xf32, #tpu.memory_space<vmem>>, vector<1x128xf32>,
    %c2_34 = arith.constant 2 : index
    %c0_35 = arith.constant 0 : index
    %81 = vector.load %arg7[%c2_34, %c0_35] : memref<10x128xf32, #tpu.memory_space<vmem>>, vector<1x128xf32>
    %82 = arith.mulf %75, %33 : vector<16x128xf32>
    %cst_36 = arith.constant dense<0.000000e+00> : vector<128xf32>
    %83 = vector.multi_reduction <add>, %82, %cst_36 [0] : vector<16x128xf32> to vector<128xf32>
    %84 = vector.shape_cast %83 : vector<128xf32> to vector<1x128xf32>
    %85 = arith.addf %81, %84 : vector<1x128xf32>
    %c2_37 = arith.constant 2 : index
    %c0_38 = arith.constant 0 : index
    %86 = vector.load %arg7[%c2_37, %c0_38] : memref<10x128xf32, #tpu.memory_space<vmem>>, vector<1x128xf32>
    tpu.vector_store %arg7[%c2_37, %c0_38], %85 {strides = array<i32>} : memref<10x128xf32, #tpu.memory_space<vmem>>, vector<1x128xf32>,
    %c3_i32 = arith.constant 3 : i32
    %87 = vector.broadcast %c3_i32 : i32 to vector<16x128xi32>
    %88 = arith.cmpi eq, %41, %87 : vector<16x128xi32>
    %89 = arith.extui %88 : vector<16x128xi1> to vector<16x128xi32>
    %90 = arith.sitofp %89 : vector<16x128xi32> to vector<16x128xf32>
    %c3 = arith.constant 3 : index
    %c0_39 = arith.constant 0 : index
    %91 = vector.load %arg6[%c3, %c0_39] : memref<10x128xf32, #tpu.memory_space<vmem>>, vector<1x128xf32>
    %cst_40 = arith.constant dense<0.000000e+00> : vector<128xf32>
    %92 = vector.multi_reduction <add>, %90, %cst_40 [0] : vector<16x128xf32> to vector<128xf32>
    %93 = vector.shape_cast %92 : vector<128xf32> to vector<1x128xf32>
    %94 = arith.addf %91, %93 : vector<1x128xf32>
    %c3_41 = arith.constant 3 : index
    %c0_42 = arith.constant 0 : index
    %95 = vector.load %arg6[%c3_41, %c0_42] : memref<10x128xf32, #tpu.memory_space<vmem>>, vector<1x128xf32>
    tpu.vector_store %arg6[%c3_41, %c0_42], %94 {strides = array<i32>} : memref<10x128xf32, #tpu.memory_space<vmem>>, vector<1x128xf32>,
    %c3_43 = arith.constant 3 : index
    %c0_44 = arith.constant 0 : index
    %96 = vector.load %arg7[%c3_43, %c0_44] : memref<10x128xf32, #tpu.memory_space<vmem>>, vector<1x128xf32>
    %97 = arith.mulf %90, %33 : vector<16x128xf32>
    %cst_45 = arith.constant dense<0.000000e+00> : vector<128xf32>
    %98 = vector.multi_reduction <add>, %97, %cst_45 [0] : vector<16x128xf32> to vector<128xf32>
    %99 = vector.shape_cast %98 : vector<128xf32> to vector<1x128xf32>
    %100 = arith.addf %96, %99 : vector<1x128xf32>
    %c3_46 = arith.constant 3 : index
    %c0_47 = arith.constant 0 : index
    %101 = vector.load %arg7[%c3_46, %c0_47] : memref<10x128xf32, #tpu.memory_space<vmem>>, vector<1x128xf32>
    tpu.vector_store %arg7[%c3_46, %c0_47], %100 {strides = array<i32>} : memref<10x128xf32, #tpu.memory_space<vmem>>, vector<1x128xf32>,
    %c4_i32 = arith.constant 4 : i32
    %102 = vector.broadcast %c4_i32 : i32 to vector<16x128xi32>
    %103 = arith.cmpi eq, %41, %102 : vector<16x128xi32>
    %104 = arith.extui %103 : vector<16x128xi1> to vector<16x128xi32>
    %105 = arith.sitofp %104 : vector<16x128xi32> to vector<16x128xf32>
    %c4 = arith.constant 4 : index
    %c0_48 = arith.constant 0 : index
    %106 = vector.load %arg6[%c4, %c0_48] : memref<10x128xf32, #tpu.memory_space<vmem>>, vector<1x128xf32>
    %cst_49 = arith.constant dense<0.000000e+00> : vector<128xf32>
    %107 = vector.multi_reduction <add>, %105, %cst_49 [0] : vector<16x128xf32> to vector<128xf32>
    %108 = vector.shape_cast %107 : vector<128xf32> to vector<1x128xf32>
    %109 = arith.addf %106, %108 : vector<1x128xf32>
    %c4_50 = arith.constant 4 : index
    %c0_51 = arith.constant 0 : index
    %110 = vector.load %arg6[%c4_50, %c0_51] : memref<10x128xf32, #tpu.memory_space<vmem>>, vector<1x128xf32>
    tpu.vector_store %arg6[%c4_50, %c0_51], %109 {strides = array<i32>} : memref<10x128xf32, #tpu.memory_space<vmem>>, vector<1x128xf32>,
    %c4_52 = arith.constant 4 : index
    %c0_53 = arith.constant 0 : index
    %111 = vector.load %arg7[%c4_52, %c0_53] : memref<10x128xf32, #tpu.memory_space<vmem>>, vector<1x128xf32>
    %112 = arith.mulf %105, %33 : vector<16x128xf32>
    %cst_54 = arith.constant dense<0.000000e+00> : vector<128xf32>
    %113 = vector.multi_reduction <add>, %112, %cst_54 [0] : vector<16x128xf32> to vector<128xf32>
    %114 = vector.shape_cast %113 : vector<128xf32> to vector<1x128xf32>
    %115 = arith.addf %111, %114 : vector<1x128xf32>
    %c4_55 = arith.constant 4 : index
    %c0_56 = arith.constant 0 : index
    %116 = vector.load %arg7[%c4_55, %c0_56] : memref<10x128xf32, #tpu.memory_space<vmem>>, vector<1x128xf32>
    tpu.vector_store %arg7[%c4_55, %c0_56], %115 {strides = array<i32>} : memref<10x128xf32, #tpu.memory_space<vmem>>, vector<1x128xf32>,
    %c5_i32 = arith.constant 5 : i32
    %117 = vector.broadcast %c5_i32 : i32 to vector<16x128xi32>
    %118 = arith.cmpi eq, %41, %117 : vector<16x128xi32>
    %119 = arith.extui %118 : vector<16x128xi1> to vector<16x128xi32>
    %120 = arith.sitofp %119 : vector<16x128xi32> to vector<16x128xf32>
    %c5 = arith.constant 5 : index
    %c0_57 = arith.constant 0 : index
    %121 = vector.load %arg6[%c5, %c0_57] : memref<10x128xf32, #tpu.memory_space<vmem>>, vector<1x128xf32>
    %cst_58 = arith.constant dense<0.000000e+00> : vector<128xf32>
    %122 = vector.multi_reduction <add>, %120, %cst_58 [0] : vector<16x128xf32> to vector<128xf32>
    %123 = vector.shape_cast %122 : vector<128xf32> to vector<1x128xf32>
    %124 = arith.addf %121, %123 : vector<1x128xf32>
    %c5_59 = arith.constant 5 : index
    %c0_60 = arith.constant 0 : index
    %125 = vector.load %arg6[%c5_59, %c0_60] : memref<10x128xf32, #tpu.memory_space<vmem>>, vector<1x128xf32>
    tpu.vector_store %arg6[%c5_59, %c0_60], %124 {strides = array<i32>} : memref<10x128xf32, #tpu.memory_space<vmem>>, vector<1x128xf32>,
    %c5_61 = arith.constant 5 : index
    %c0_62 = arith.constant 0 : index
    %126 = vector.load %arg7[%c5_61, %c0_62] : memref<10x128xf32, #tpu.memory_space<vmem>>, vector<1x128xf32>
    %127 = arith.mulf %120, %33 : vector<16x128xf32>
    %cst_63 = arith.constant dense<0.000000e+00> : vector<128xf32>
    %128 = vector.multi_reduction <add>, %127, %cst_63 [0] : vector<16x128xf32> to vector<128xf32>
    %129 = vector.shape_cast %128 : vector<128xf32> to vector<1x128xf32>
    %130 = arith.addf %126, %129 : vector<1x128xf32>
    %c5_64 = arith.constant 5 : index
    %c0_65 = arith.constant 0 : index
    %131 = vector.load %arg7[%c5_64, %c0_65] : memref<10x128xf32, #tpu.memory_space<vmem>>, vector<1x128xf32>
    tpu.vector_store %arg7[%c5_64, %c0_65], %130 {strides = array<i32>} : memref<10x128xf32, #tpu.memory_space<vmem>>, vector<1x128xf32>,
    %c6_i32 = arith.constant 6 : i32
    %132 = vector.broadcast %c6_i32 : i32 to vector<16x128xi32>
    %133 = arith.cmpi eq, %41, %132 : vector<16x128xi32>
    %134 = arith.extui %133 : vector<16x128xi1> to vector<16x128xi32>
    %135 = arith.sitofp %134 : vector<16x128xi32> to vector<16x128xf32>
    %c6 = arith.constant 6 : index
    %c0_66 = arith.constant 0 : index
    %136 = vector.load %arg6[%c6, %c0_66] : memref<10x128xf32, #tpu.memory_space<vmem>>, vector<1x128xf32>
    %cst_67 = arith.constant dense<0.000000e+00> : vector<128xf32>
    %137 = vector.multi_reduction <add>, %135, %cst_67 [0] : vector<16x128xf32> to vector<128xf32>
    %138 = vector.shape_cast %137 : vector<128xf32> to vector<1x128xf32>
    %139 = arith.addf %136, %138 : vector<1x128xf32>
    %c6_68 = arith.constant 6 : index
    %c0_69 = arith.constant 0 : index
    %140 = vector.load %arg6[%c6_68, %c0_69] : memref<10x128xf32, #tpu.memory_space<vmem>>, vector<1x128xf32>
    tpu.vector_store %arg6[%c6_68, %c0_69], %139 {strides = array<i32>} : memref<10x128xf32, #tpu.memory_space<vmem>>, vector<1x128xf32>,
    %c6_70 = arith.constant 6 : index
    %c0_71 = arith.constant 0 : index
    %141 = vector.load %arg7[%c6_70, %c0_71] : memref<10x128xf32, #tpu.memory_space<vmem>>, vector<1x128xf32>
    %142 = arith.mulf %135, %33 : vector<16x128xf32>
    %cst_72 = arith.constant dense<0.000000e+00> : vector<128xf32>
    %143 = vector.multi_reduction <add>, %142, %cst_72 [0] : vector<16x128xf32> to vector<128xf32>
    %144 = vector.shape_cast %143 : vector<128xf32> to vector<1x128xf32>
    %145 = arith.addf %141, %144 : vector<1x128xf32>
    %c6_73 = arith.constant 6 : index
    %c0_74 = arith.constant 0 : index
    %146 = vector.load %arg7[%c6_73, %c0_74] : memref<10x128xf32, #tpu.memory_space<vmem>>, vector<1x128xf32>
    tpu.vector_store %arg7[%c6_73, %c0_74], %145 {strides = array<i32>} : memref<10x128xf32, #tpu.memory_space<vmem>>, vector<1x128xf32>,
    %c7_i32 = arith.constant 7 : i32
    %147 = vector.broadcast %c7_i32 : i32 to vector<16x128xi32>
    %148 = arith.cmpi eq, %41, %147 : vector<16x128xi32>
    %149 = arith.extui %148 : vector<16x128xi1> to vector<16x128xi32>
    %150 = arith.sitofp %149 : vector<16x128xi32> to vector<16x128xf32>
    %c7 = arith.constant 7 : index
    %c0_75 = arith.constant 0 : index
    %151 = vector.load %arg6[%c7, %c0_75] : memref<10x128xf32, #tpu.memory_space<vmem>>, vector<1x128xf32>
    %cst_76 = arith.constant dense<0.000000e+00> : vector<128xf32>
    %152 = vector.multi_reduction <add>, %150, %cst_76 [0] : vector<16x128xf32> to vector<128xf32>
    %153 = vector.shape_cast %152 : vector<128xf32> to vector<1x128xf32>
    %154 = arith.addf %151, %153 : vector<1x128xf32>
    %c7_77 = arith.constant 7 : index
    %c0_78 = arith.constant 0 : index
    %155 = vector.load %arg6[%c7_77, %c0_78] : memref<10x128xf32, #tpu.memory_space<vmem>>, vector<1x128xf32>
    tpu.vector_store %arg6[%c7_77, %c0_78], %154 {strides = array<i32>} : memref<10x128xf32, #tpu.memory_space<vmem>>, vector<1x128xf32>,
    %c7_79 = arith.constant 7 : index
    %c0_80 = arith.constant 0 : index
    %156 = vector.load %arg7[%c7_79, %c0_80] : memref<10x128xf32, #tpu.memory_space<vmem>>, vector<1x128xf32>
    %157 = arith.mulf %150, %33 : vector<16x128xf32>
    %cst_81 = arith.constant dense<0.000000e+00> : vector<128xf32>
    %158 = vector.multi_reduction <add>, %157, %cst_81 [0] : vector<16x128xf32> to vector<128xf32>
    %159 = vector.shape_cast %158 : vector<128xf32> to vector<1x128xf32>
    %160 = arith.addf %156, %159 : vector<1x128xf32>
    %c7_82 = arith.constant 7 : index
    %c0_83 = arith.constant 0 : index
    %161 = vector.load %arg7[%c7_82, %c0_83] : memref<10x128xf32, #tpu.memory_space<vmem>>, vector<1x128xf32>
    tpu.vector_store %arg7[%c7_82, %c0_83], %160 {strides = array<i32>} : memref<10x128xf32, #tpu.memory_space<vmem>>, vector<1x128xf32>,
    %c8_i32 = arith.constant 8 : i32
    %162 = vector.broadcast %c8_i32 : i32 to vector<16x128xi32>
    %163 = arith.cmpi eq, %41, %162 : vector<16x128xi32>
    %164 = arith.extui %163 : vector<16x128xi1> to vector<16x128xi32>
    %165 = arith.sitofp %164 : vector<16x128xi32> to vector<16x128xf32>
    %c8 = arith.constant 8 : index
    %c0_84 = arith.constant 0 : index
    %166 = vector.load %arg6[%c8, %c0_84] : memref<10x128xf32, #tpu.memory_space<vmem>>, vector<1x128xf32>
    %cst_85 = arith.constant dense<0.000000e+00> : vector<128xf32>
    %167 = vector.multi_reduction <add>, %165, %cst_85 [0] : vector<16x128xf32> to vector<128xf32>
    %168 = vector.shape_cast %167 : vector<128xf32> to vector<1x128xf32>
    %169 = arith.addf %166, %168 : vector<1x128xf32>
    %c8_86 = arith.constant 8 : index
    %c0_87 = arith.constant 0 : index
    %170 = vector.load %arg6[%c8_86, %c0_87] : memref<10x128xf32, #tpu.memory_space<vmem>>, vector<1x128xf32>
    tpu.vector_store %arg6[%c8_86, %c0_87], %169 {strides = array<i32>} : memref<10x128xf32, #tpu.memory_space<vmem>>, vector<1x128xf32>,
    %c8_88 = arith.constant 8 : index
    %c0_89 = arith.constant 0 : index
    %171 = vector.load %arg7[%c8_88, %c0_89] : memref<10x128xf32, #tpu.memory_space<vmem>>, vector<1x128xf32>
    %172 = arith.mulf %165, %33 : vector<16x128xf32>
    %cst_90 = arith.constant dense<0.000000e+00> : vector<128xf32>
    %173 = vector.multi_reduction <add>, %172, %cst_90 [0] : vector<16x128xf32> to vector<128xf32>
    %174 = vector.shape_cast %173 : vector<128xf32> to vector<1x128xf32>
    %175 = arith.addf %171, %174 : vector<1x128xf32>
    %c8_91 = arith.constant 8 : index
    %c0_92 = arith.constant 0 : index
    %176 = vector.load %arg7[%c8_91, %c0_92] : memref<10x128xf32, #tpu.memory_space<vmem>>, vector<1x128xf32>
    tpu.vector_store %arg7[%c8_91, %c0_92], %175 {strides = array<i32>} : memref<10x128xf32, #tpu.memory_space<vmem>>, vector<1x128xf32>,
    %c9_i32_93 = arith.constant 9 : i32
    %177 = vector.broadcast %c9_i32_93 : i32 to vector<16x128xi32>
    %178 = arith.cmpi eq, %41, %177 : vector<16x128xi32>
    %179 = arith.extui %178 : vector<16x128xi1> to vector<16x128xi32>
    %180 = arith.sitofp %179 : vector<16x128xi32> to vector<16x128xf32>
    %c9 = arith.constant 9 : index
    %c0_94 = arith.constant 0 : index
    %181 = vector.load %arg6[%c9, %c0_94] : memref<10x128xf32, #tpu.memory_space<vmem>>, vector<1x128xf32>
    %cst_95 = arith.constant dense<0.000000e+00> : vector<128xf32>
    %182 = vector.multi_reduction <add>, %180, %cst_95 [0] : vector<16x128xf32> to vector<128xf32>
    %183 = vector.shape_cast %182 : vector<128xf32> to vector<1x128xf32>
    %184 = arith.addf %181, %183 : vector<1x128xf32>
    %c9_96 = arith.constant 9 : index
    %c0_97 = arith.constant 0 : index
    %185 = vector.load %arg6[%c9_96, %c0_97] : memref<10x128xf32, #tpu.memory_space<vmem>>, vector<1x128xf32>
    tpu.vector_store %arg6[%c9_96, %c0_97], %184 {strides = array<i32>} : memref<10x128xf32, #tpu.memory_space<vmem>>, vector<1x128xf32>,
    %c9_98 = arith.constant 9 : index
    %c0_99 = arith.constant 0 : index
    %186 = vector.load %arg7[%c9_98, %c0_99] : memref<10x128xf32, #tpu.memory_space<vmem>>, vector<1x128xf32>
    %187 = arith.mulf %180, %33 : vector<16x128xf32>
    %cst_100 = arith.constant dense<0.000000e+00> : vector<128xf32>
    %188 = vector.multi_reduction <add>, %187, %cst_100 [0] : vector<16x128xf32> to vector<128xf32>
    %189 = vector.shape_cast %188 : vector<128xf32> to vector<1x128xf32>
    %190 = arith.addf %186, %189 : vector<1x128xf32>
    %c9_101 = arith.constant 9 : index
    %c0_102 = arith.constant 0 : index
    %191 = vector.load %arg7[%c9_101, %c0_102] : memref<10x128xf32, #tpu.memory_space<vmem>>, vector<1x128xf32>
    tpu.vector_store %arg7[%c9_101, %c0_102], %190 {strides = array<i32>} : memref<10x128xf32, #tpu.memory_space<vmem>>, vector<1x128xf32>,
    %c0_i32_103 = arith.constant 0 : i32
    %192 = arith.cmpi eq, %arg0, %c0_i32_103 : i32
    %193 = arith.extui %192 : i1 to i32
    %c0_i32_104 = arith.constant 0 : i32
    %194 = arith.cmpi ne, %193, %c0_i32_104 : i32
    scf.if %194 {
      %c0_105 = arith.constant 0 : index
      %c0_106 = arith.constant 0 : index
      %195 = vector.load %arg6[%c0_105, %c0_106] : memref<10x128xf32, #tpu.memory_space<vmem>>, vector<10x128xf32>
      %cst_107 = arith.constant dense<0.000000e+00> : vector<10xf32>
      %196 = vector.multi_reduction <add>, %195, %cst_107 [1] : vector<10x128xf32> to vector<10xf32>
      %197 = vector.shape_cast %196 : vector<10xf32> to vector<10x1xf32>
      %c0_108 = arith.constant 0 : index
      %c0_109 = arith.constant 0 : index
      %198 = vector.load %arg7[%c0_108, %c0_109] : memref<10x128xf32, #tpu.memory_space<vmem>>, vector<10x128xf32>
      %cst_110 = arith.constant dense<0.000000e+00> : vector<10xf32>
      %199 = vector.multi_reduction <add>, %198, %cst_110 [1] : vector<10x128xf32> to vector<10xf32>
      %200 = vector.shape_cast %199 : vector<10xf32> to vector<10x1xf32>
      %c0_111 = arith.constant 0 : index
      %c0_112 = arith.constant 0 : index
      %201 = vector.load %arg1[%c0_111, %c0_112] : memref<10x1xf32, #tpu.memory_space<vmem>>, vector<10x1xf32>
      %cst_113 = arith.constant 0.000000e+00 : f32
      %202 = vector.broadcast %cst_113 : f32 to vector<10x1xf32>
      %203 = arith.cmpf ogt, %197, %202 : vector<10x1xf32>
      %cst_114 = arith.constant 1.000000e-01 : f32
      %204 = vector.broadcast %cst_114 : f32 to vector<10x1xf32>
      %205 = arith.mulf %204, %201 : vector<10x1xf32>
      %cst_115 = arith.constant 0.899999976 : f32
      %206 = vector.broadcast %cst_115 : f32 to vector<10x1xf32>
      %207 = arith.mulf %206, %197 : vector<10x1xf32>
      %208 = arith.addf %205, %207 : vector<10x1xf32>
      %209 = arith.select %203, %208, %201 : vector<10x1xi1>, vector<10x1xf32>
      %cst_116 = arith.constant 9.99999996E-13 : f32
      %210 = vector.broadcast %cst_116 : f32 to vector<10x1xf32>
      %211 = arith.maximumf %209, %210 : vector<10x1xf32>
      %cst_117 = arith.constant 1.280000e+02 : f32
      %212 = vector.broadcast %cst_117 : f32 to vector<10x1xf32>
      %213 = arith.divf %212, %211 : vector<10x1xf32>
      %cst_118 = arith.constant 0.000000e+00 : f32
      %214 = vector.broadcast %cst_118 : f32 to vector<10x1xf32>
      %215 = arith.select %203, %213, %214 : vector<10x1xi1>, vector<10x1xf32>
      %216 = arith.extui %203 : vector<10x1xi1> to vector<10x1xi32>
      %217 = arith.sitofp %216 : vector<10x1xi32> to vector<10x1xf32>
      %218 = vector.shape_cast %217 : vector<10x1xf32> to vector<1x10x1xf32>
      %cst_119 = arith.constant dense<0.000000e+00> : vector<1xf32>
      %219 = vector.multi_reduction <add>, %218, %cst_119 [1, 2] : vector<1x10x1xf32> to vector<1xf32>
      %220 = vector.shape_cast %219 : vector<1xf32> to vector<1x1x1xf32>
      %221 = vector.extract %220[0, 0, 0] : f32 from vector<1x1x1xf32>
      %cst_120 = arith.constant 1.000000e+00 : f32
      %222 = arith.maximumf %221, %cst_120 : f32
      %223 = vector.broadcast %222 : f32 to vector<10x1xf32>
      %224 = arith.divf %215, %223 : vector<10x1xf32>
      %c0_121 = arith.constant 0 : index
      %c0_122 = arith.constant 0 : index
      %225 = vector.load %arg5[%c0_121, %c0_122] : memref<10x1xf32, #tpu.memory_space<vmem>>, vector<10x1xf32>
      tpu.vector_store %arg5[%c0_121, %c0_122], %209 {strides = array<i32>} : memref<10x1xf32, #tpu.memory_space<vmem>>, vector<10x1xf32>,
      %226 = arith.mulf %200, %224 : vector<10x1xf32>
      %227 = vector.shape_cast %226 : vector<10x1xf32> to vector<1x10x1xf32>
      %cst_123 = arith.constant dense<0.000000e+00> : vector<1xf32>
      %228 = vector.multi_reduction <add>, %227, %cst_123 [1, 2] : vector<1x10x1xf32> to vector<1xf32>
      %229 = vector.shape_cast %228 : vector<1xf32> to vector<1x1x1xf32>
      %230 = vector.extract %229[0, 0, 0] : f32 from vector<1x1x1xf32>
      %cst_124 = arith.constant 1.280000e+02 : f32
      %231 = arith.divf %230, %cst_124 : f32
      %cst_125 = arith.constant 1.000000e+00 : f32
      %232 = arith.mulf %231, %cst_125 : f32
      %c0_126 = arith.constant 0 : index
      %c0_127 = arith.constant 0 : index
      %233 = memref.load %arg4[%c0_126, %c0_127] : memref<1x1xf32, #tpu.memory_space<smem>>
      memref.store %232, %arg4[%c0_126, %c0_127] : memref<1x1xf32, #tpu.memory_space<smem>>
    } else {
    }
    return
  }
  func.func @transform_0(%arg0: i32) -> (i32, i32) {
    %c0_i32 = arith.constant 0 : i32
    %c0_i32_0 = arith.constant 0 : i32
    %c0_i32_1 = arith.constant 0 : i32
    return %c0_i32, %c0_i32_0 : i32, i32
  }
  func.func @transform_1(%arg0: i32) -> (i32, i32) {
    %c0_i32 = arith.constant 0 : i32
    %c0_i32_0 = arith.constant 0 : i32
    return %c0_i32, %arg0 : i32, i32
  }
  func.func @transform_2(%arg0: i32) -> (i32, i32) {
    %c0_i32 = arith.constant 0 : i32
    %c0_i32_0 = arith.constant 0 : i32
    return %c0_i32, %arg0 : i32, i32
  }
  func.func @transform_3(%arg0: i32) -> (i32, i32) {
    %c0_i32 = arith.constant 0 : i32
    %c0_i32_0 = arith.constant 0 : i32
    %c0_i32_1 = arith.constant 0 : i32
    return %c0_i32, %c0_i32_0 : i32, i32
  }
  func.func @transform_4(%arg0: i32) -> (i32, i32) {
    %c0_i32 = arith.constant 0 : i32
    %c0_i32_0 = arith.constant 0 : i32
    %c0_i32_1 = arith.constant 0 : i32
    return %c0_i32, %c0_i32_0 : i32, i32
  }
}

</mosaic_0001>

<bundles_post_ra>
// kernel: tpu_custom_call.1
= control target key start
LH: loop header
LB: loop body
LE: loop exit
PB: predicated region body
PF: predicated region fallthrough
CT: control target
= control target key end

     0   :  { %v40_v2 = vlaneseq  ;;  %v639_v3 = vmov 0.0   ;;  %s947_s0 = inlined_call_operand.vmem [shape: f32[10,1], index: 0, kind: input, shape index: {}]   ;;  %s948_s1 = inlined_call_operand.vmem [shape: f32[16,128], index: 1, kind: input, shape index: {}]   ;;  %s949_s2 = inlined_call_operand.vmem [shape: s32[1,128], index: 2, kind: input, shape index: {}]   ;;  %s950_s3 = inlined_call_operand.hbm [shape: f32[1,1], index: 3, kind: output, shape index: {0}]   ;;  %s951_s4 = inlined_call_operand.vmem [shape: f32[10,1], index: 4, kind: output, shape index: {1}]  }
   0x1   :  { %v672_v0 = vld [vmem:[%s948_s1] sm:$0xff]  ;;  %v677_v1 = vld [vmem:[%s948_s1 + $0x8] sm:$0xff]  ;;  %21 = vst [vmem:[#allocation2] sm:$0xff] %v639_v3 }
   0x2   :  { %v604_v4 = vld [vmem:[%s949_s2] ss:$0 sm:$0xff]  ;;  %v50_v5 = vand.u32 2147483647, %v672_v0  ;;  %v41_v6 = vshrl.u32 %v40_v2, 7  ;;  %23 = vst [vmem:[#allocation3] sm:$0xff] %v639_v3 }
   0x3   :  { %v51_v7 = vand.u32 2147483647, %v677_v1  ;;  %22 = vst [vmem:[#allocation2 + $0x8] sm:$0x3] %v639_v3 }
   0x4   :  { %v52_v8 = vsub.f32 0.0, %v50_v5  ;;  %v42_v9 = vadd.s32 8, %v41_v6  ;;  %vm44_vm0 = vcmp.eq.s32.totalorder %v41_v6, %v604_v4  ;;  %24 = vst [vmem:[#allocation3 + $0x8] sm:$0x3] %v639_v3 }
   0x5   :  { %v53_v10 = vsub.f32 0.0, %v51_v7 }
   0x6   :  { %10 = vsyncpa [#allocation5], 0  ;;  %v54_v11 = vmul.f32 1.442695, %v52_v8  ;;  %vm45_vm1 = vcmp.eq.s32.totalorder %v42_v9, %v604_v4  ;;  %v689_v12 = vsel %vm44_vm0, 1.0, %v639_v3  ;;  %v100_v15 = vmax.f32 %v672_v0, 0.0 }
   0x7   :  { %v56_v13 = vmul.f32 1.442695, %v53_v10  ;;  %v692_v14 = vsel %vm45_vm1, 1.0, %v639_v3  ;;  %v101_v16 = vmax.f32 %v677_v1, 0.0  ;;  %v102_v17 = vmul.f32 %v689_v12, %v672_v0  ;;  %v35_v60 = vld [vmem:[%s949_s2] sm:$0x1] }
   0x8   :  { %605 = vpow2.f32 %v54_v11  ;;  %v103_v18 = vmul.f32 %v692_v14, %v677_v1  ;;  %vm90_vm12 = vcmp.ge.f32.partialorder %v672_v0, 0.0  ;;  %vm91_vm13 = vcmp.ge.f32.partialorder %v677_v1, 0.0  ;;  %s641_s8 = smov 1.0   ;;  %s550_s12 = sshll.u32 %s950_s3, 4  ;;  %s551_s12 = int_to_ptr.hbm [resolvable:$true] %s550_s12 }
   0x9   :  { %607 = vpow2.f32 %v56_v13  ;;  %v104_v19 = vsub.f32 %v100_v15, %v102_v17  ;;  %vm36_vm14 = vcmp.ge.s32.totalorder %v35_v60, 0  ;;  %v640_v9 = vmov 0   ;;  %s643_s16 = smov [#allocation4]  }
   0xa   :  { %v105_v20 = vsub.f32 %v101_v16, %v103_v18  ;;  %v37_v10 = vsel %vm36_vm14, 1, %v640_v9 }
   0xb   :  { %v38_v16 = vperm.slane %v37_v10, 0 }
   0xd   :  { %vm39_vm15 = vcmp.eq.s32.totalorder %v38_v16, 1 }
   0xe   :  { %v606_v21 = vpop.eup %605 }
   0xf   :  { %v608_v22 = vpop.eup %607  ;;  %v58_v23 = vadd.f32 1.0, %v606_v21  ;;  %v109_v25 = vmul.f32 -0.5, %v606_v21  ;;  %v112_v28 = vand.u32 2147483647, %v606_v21 }
  0x10   :  { %v59_v24 = vadd.f32 1.0, %v608_v22  ;;  %v118_v26 = vmul.f32 -0.5, %v608_v22  ;;  %v121_v30 = vand.u32 2147483647, %v608_v22 }
  0x11   :  { %609 = vrcp.f32 %v58_v23  ;;  %v110_v27 = vadd.f32 1.0, %v109_v25  ;;  %vm65_vm2 = vweird.f32 %v58_v23  ;;  %v69_v32 = vand.u32 2147483647, %v58_v23 }
  0x12   :  { %611 = vrcp.f32 %v59_v24  ;;  %v119_v29 = vadd.f32 1.0, %v118_v26  ;;  %v71_v35 = vand.u32 2147483648, %v58_v23  ;;  %vm80_vm3 = vweird.f32 %v59_v24 }
  0x13   :  { %613 = vlog2.f32 %v58_v23  ;;  %v111_v36 = vmul.f32 %v606_v21, %v110_v27  ;;  %v86_v39 = vand.u32 2147483648, %v59_v24  ;;  %vm700_vm4 = vcmp.lt.f32.partialorder %v112_v28, 0.0004427343 }
  0x14   :  { %615 = vlog2.f32 %v59_v24  ;;  %v120_v41 = vmul.f32 %v608_v22, %v119_v29  ;;  %vm704_vm6 = vcmp.lt.f32.partialorder %v121_v30, 0.0004427343  ;;  %v84_v47 = vand.u32 2147483647, %v59_v24 }
  0x15   :  { %v72_v51 = vor.u32 1.1754944e-38, %v71_v35  ;;  %vm70_vm9 = vcmp.eq.f32.partialorder %v69_v32, 8.507059e+37  ;;  %v87_v56 = vor.u32 1.1754944e-38, %v86_v39 }
  0x16   :  { %vm85_vm11 = vcmp.eq.f32.partialorder %v84_v47, 8.507059e+37 }
  0x17   :  { %v610_v31 = vpop.eup %609 }
  0x18   :  { %v612_v33 = vpop.eup %611  ;;  %v61_v34 = vmul.f32 %v610_v31, %v58_v23  ;;  %vm66_vm5 = vweird.f32 %v610_v31 }
  0x19   :  { %v614_v37 = vpop.eup %613  ;;  %v76_v38 = vmul.f32 %v612_v33, %v59_v24  ;;  %vm81_vm7 = vweird.f32 %v612_v33  ;;  %vm67_vm8 = vmor %vm65_vm2, %vm66_vm5 }
  0x1a   :  { %v616_v42 = vpop.eup %615  ;;  %v62_v43 = vsub.f32 1.0, %v61_v34  ;;  %v108_v44 = vmul.f32 0.6931472, %v614_v37  ;;  %vm82_vm10 = vmor %vm80_vm3, %vm81_vm7 }
  0x1b   :  { %v77_v46 = vsub.f32 1.0, %v76_v38  ;;  %v117_v48 = vmul.f32 0.6931472, %v616_v42 }
  0x1c   :  { %v63_v49 = vmul.f32 %v610_v31, %v62_v43  ;;  %v114_v50 = vsel %vm700_vm4, %v111_v36, %v108_v44 }
  0x1d   :  { %v78_v52 = vmul.f32 %v612_v33, %v77_v46  ;;  %v123_v53 = vsel %vm704_vm6, %v120_v41, %v117_v48  ;;  %v713_v54 = vadd.f32 %v114_v50, %v104_v19 }
  0x1e   :  { %v64_v55 = vadd.f32 %v610_v31, %v63_v49  ;;  %v716_v57 = vadd.f32 %v123_v53, %v105_v20 }
  0x1f   :  { %v79_v58 = vadd.f32 %v612_v33, %v78_v52 }
  0x20   :  { %v68_v59 = vsel %vm67_vm8, %v610_v31, %v64_v55 }
  0x21   :  { %v73_v61 = vsel %vm70_vm9, %v72_v51, %v68_v59  ;;  %v83_v62 = vsel %vm82_vm10, %v612_v33, %v79_v58 }
  0x22   :  { %v88_v63 = vsel %vm85_vm11, %v87_v56, %v83_v62  ;;  %v92_v2 = vmul.f32 %v606_v21, %v73_v61 }
  0x23   :  { %v93_v4 = vmul.f32 %v608_v22, %v88_v63 }
  0x24   :  { %v94_v5 = vsel %vm90_vm12, %v73_v61, %v92_v2 }
  0x25   :  { %v95_v6 = vsel %vm91_vm13, %v88_v63, %v93_v4  ;;  %v96_v7 = vsub.f32 %v94_v5, %v689_v12 }
  0x26   :  { %v97_v8 = vsub.f32 %v95_v6, %v692_v14  ;;  %v144_v6 = vld [vmem:[#allocation2] sm:$0x1] }
  0x27   :  { %v98_v11 = vand.u32 2147483647, %v96_v7  ;;  %v172_v7 = vld [vmem:[#allocation2 + $0x1] sm:$0x1] }
  0x28   :  { %v99_v13 = vand.u32 2147483647, %v97_v8 }
  0x29   :  { %v126_v15 = vmul.f32 10.0, %v98_v11 }
  0x2a   :  { %v127_v17 = vmul.f32 10.0, %v99_v13 }
  0x2b   :  { %v128_v0 = vfloor.f32 %v126_v15 }
  0x2c   :  { %v129_v18 = vfloor.f32 %v127_v17 }
  0x2d   :  { %v589_v19 = vcvt.f32.s32 %v128_v0 }
  0x2e   :  { %v591_v1 = vcvt.f32.s32 %v129_v18 }
  0x2f   :  { %vm132_vm0 = vcmp.lt.s32.totalorder %v589_v19, 9 }
  0x30   :  { %v133_v20 = vsel %vm132_vm0, %v589_v19, 9  ;;  %vm134_vm1 = vcmp.lt.s32.totalorder %v591_v1, 9 }
  0x31   :  { %v135_v21 = vsel %vm134_vm1, %v591_v1, 9  ;;  %v725_v22 = vsel %vm39_vm15, %v133_v20, 4294967295  ;;  %v200_v20 = vld [vmem:[#allocation2 + $0x2] sm:$0x1] }
  0x32   :  { %v727_v12 = vsel %vm39_vm15, %v135_v21, 4294967295  ;;  %vm138_vm2 = vcmp.eq.s32.totalorder %v725_v22, 0  ;;  %vm166_vm3 = vcmp.eq.s32.totalorder %v725_v22, 1  ;;  %vm194_vm4 = vcmp.eq.s32.totalorder %v725_v22, 2 }
  0x33   :  { %vm139_vm5 = vcmp.eq.s32.totalorder %v727_v12, 0  ;;  %v566_v14 = vsel %vm138_vm2, 1.0, %v639_v3  ;;  %vm167_vm6 = vcmp.eq.s32.totalorder %v727_v12, 1  ;;  %v568_v23 = vsel %vm166_vm3, 1.0, %v639_v3 }
  0x34   :  { %v567_v24 = vsel %vm139_vm5, 1.0, %v639_v3  ;;  %v738_v25 = vmul.f32 %v566_v14, %v713_v54  ;;  %v569_v26 = vsel %vm167_vm6, 1.0, %v639_v3  ;;  %v742_v27 = vmul.f32 %v568_v23, %v713_v54 }
  0x35   :  { %v145_v28 = vadd.f32 %v567_v24, %v566_v14  ;;  %v745_v29 = vmul.f32 %v567_v24, %v716_v57  ;;  %v173_v30 = vadd.f32 %v569_v26, %v568_v23  ;;  %v748_v31 = vmul.f32 %v569_v26, %v716_v57  ;;  %v228_v24 = vld [vmem:[#allocation2 + $0x3] sm:$0x1] }
  0x36   :  { %vm195_vm7 = vcmp.eq.s32.totalorder %v727_v12, 2  ;;  %v570_v32 = vsel %vm194_vm4, 1.0, %v639_v3  ;;  %vm222_vm8 = vcmp.eq.s32.totalorder %v725_v22, 3  ;;  %vm223_vm9 = vcmp.eq.s32.totalorder %v727_v12, 3 }
  0x37   :  { %v146_v33 = vrot.slane %v145_v28, 4  ;;  %v174_v34 = vrot.slane %v173_v30, 4  ;;  %v571_v35 = vsel %vm195_vm7, 1.0, %v639_v3  ;;  %v756_v36 = vmul.f32 %v570_v32, %v713_v54 }
  0x38   :  { %v201_v37 = vadd.f32 %v571_v35, %v570_v32  ;;  %v759_v38 = vmul.f32 %v571_v35, %v716_v57  ;;  %v572_v39 = vsel %vm222_vm8, 1.0, %v639_v3  ;;  %v573_v40 = vsel %vm223_vm9, 1.0, %v639_v3 }
  0x39   :  { %v147_v41 = vadd.f32 %v146_v33, %v145_v28  ;;  %v175_v42 = vadd.f32 %v174_v34, %v173_v30  ;;  %v229_v43 = vadd.f32 %v573_v40, %v572_v39  ;;  %v764_v44 = vmul.f32 %v572_v39, %v713_v54 }
  0x3a   :  { %v202_v45 = vrot.slane %v201_v37, 4  ;;  %v767_v46 = vmul.f32 %v573_v40, %v716_v57  ;;  %vm250_vm10 = vcmp.eq.s32.totalorder %v725_v22, 4  ;;  %vm251_vm11 = vcmp.eq.s32.totalorder %v727_v12, 4 }
  0x3b   :  { %v148_v47 = vrot.slane %v147_v41, 2  ;;  %v176_v48 = vrot.slane %v175_v42, 2  ;;  %v230_v49 = vrot.slane %v229_v43, 4  ;;  %v574_v50 = vsel %vm250_vm10, 1.0, %v639_v3 }
  0x3c   :  { %v203_v51 = vadd.f32 %v202_v45, %v201_v37  ;;  %v575_v52 = vsel %vm251_vm11, 1.0, %v639_v3  ;;  %v774_v53 = vmul.f32 %v574_v50, %v713_v54  ;;  %vm278_vm12 = vcmp.eq.s32.totalorder %v725_v22, 5 }
  0x3d   :  { %v149_v55 = vadd.f32 %v148_v47, %v147_v41  ;;  %v177_v56 = vadd.f32 %v176_v48, %v175_v42  ;;  %v231_v58 = vadd.f32 %v230_v49, %v229_v43  ;;  %v257_v59 = vadd.f32 %v575_v52, %v574_v50  ;;  %v256_v42 = vld [vmem:[#allocation2 + $0x4] sm:$0x1] }
  0x3e   :  { %v204_v60 = vrot.slane %v203_v51, 2  ;;  %v778_v61 = vmul.f32 %v575_v52, %v716_v57  ;;  %vm279_vm13 = vcmp.eq.s32.totalorder %v727_v12, 5  ;;  %v576_v62 = vsel %vm278_vm12, 1.0, %v639_v3 }
  0x3f   :  { %v150_v63 = vrot.slane %v149_v55, 1  ;;  %v178_v2 = vrot.slane %v177_v56, 1  ;;  %v232_v4 = vrot.slane %v231_v58, 2  ;;  %v258_v5 = vrot.slane %v257_v59, 4 }
  0x40   :  { %v205_v8 = vadd.f32 %v204_v60, %v203_v51  ;;  %v577_v9 = vsel %vm279_vm13, 1.0, %v639_v3  ;;  %v784_v10 = vmul.f32 %v576_v62, %v713_v54  ;;  %vm306_vm14 = vcmp.eq.s32.totalorder %v725_v22, 6 }
  0x41   :  { %v151_v11 = vadd.f32 %v150_v63, %v149_v55  ;;  %v179_v13 = vadd.f32 %v178_v2, %v177_v56  ;;  %v233_v15 = vadd.f32 %v232_v4, %v231_v58  ;;  %v259_v16 = vadd.f32 %v258_v5, %v257_v59 }
  0x42   :  { %v206_v17 = vrot.slane %v205_v8, 1  ;;  %v285_v0 = vadd.f32 %v577_v9, %v576_v62  ;;  %v788_v18 = vmul.f32 %v577_v9, %v716_v57  ;;  %vm307_vm15 = vcmp.eq.s32.totalorder %v727_v12, 6 }
  0x43   :  { %v152_v19 = vadd.f32 %v151_v11, %v144_v6  ;;  %v180_v1 = vadd.f32 %v179_v13, %v172_v7  ;;  %v234_v21 = vrot.slane %v233_v15, 1  ;;  %v260_v14 = vrot.slane %v259_v16, 2  ;;  %v284_v6 = vld [vmem:[#allocation2 + $0x5] sm:$0x1] }
  0x44   :  { %v207_v23 = vadd.f32 %v206_v17, %v205_v8  ;;  %v286_v26 = vrot.slane %v285_v0, 4  ;;  %v578_v28 = vsel %vm306_vm14, 1.0, %v639_v3  ;;  %v579_v30 = vsel %vm307_vm15, 1.0, %v639_v3 }
  0x45   :  { %153 = vst [vmem:[#allocation2] sm:$0x1] %v152_v19  ;;  %v235_v32 = vadd.f32 %v234_v21, %v233_v15  ;;  %v261_v33 = vadd.f32 %v260_v14, %v259_v16  ;;  %v313_v34 = vadd.f32 %v579_v30, %v578_v28  ;;  %v796_v35 = vmul.f32 %v578_v28, %v713_v54  ;;  %v340_v28 = vld [vmem:[#allocation2 + $0x7] sm:$0x1] }
  0x46   :  { %181 = vst [vmem:[#allocation2 + $0x1] sm:$0x1] %v180_v1  ;;  %v208_v37 = vadd.f32 %v207_v23, %v200_v20  ;;  %v287_v39 = vadd.f32 %v286_v26, %v285_v0  ;;  %v799_v40 = vmul.f32 %v579_v30, %v716_v57  ;;  %vm334_vm0 = vcmp.eq.s32.totalorder %v725_v22, 7  ;;  %v312_v1 = vld [vmem:[#allocation2 + $0x6] sm:$0x1] }
  0x47   :  { %v236_v41 = vadd.f32 %v235_v32, %v228_v24  ;;  %v262_v43 = vrot.slane %v261_v33, 1  ;;  %v314_v45 = vrot.slane %v313_v34, 4  ;;  %vm335_vm1 = vcmp.eq.s32.totalorder %v727_v12, 7 }
  0x48   :  { %209 = vst [vmem:[#allocation2 + $0x2] sm:$0x1] %v208_v37  ;;  %v288_v47 = vrot.slane %v287_v39, 2  ;;  %v580_v48 = vsel %vm334_vm0, 1.0, %v639_v3  ;;  %v581_v49 = vsel %vm335_vm1, 1.0, %v639_v3  ;;  %vm362_vm2 = vcmp.eq.s32.totalorder %v725_v22, 8 }
  0x49   :  { %237 = vst [vmem:[#allocation2 + $0x3] sm:$0x1] %v236_v41  ;;  %v263_v50 = vadd.f32 %v262_v43, %v261_v33  ;;  %v315_v51 = vadd.f32 %v314_v45, %v313_v34  ;;  %v341_v52 = vadd.f32 %v581_v49, %v580_v48  ;;  %v807_v55 = vmul.f32 %v580_v48, %v713_v54  ;;  %v368_v41 = vld [vmem:[#allocation2 + $0x8] sm:$0x1]  ;;  %v396_v45 = vld [vmem:[#allocation2 + $0x9] sm:$0x1] }
  0x4a   :  { %v289_v56 = vadd.f32 %v288_v47, %v287_v39  ;;  %v810_v58 = vmul.f32 %v581_v49, %v716_v57  ;;  %vm363_vm3 = vcmp.eq.s32.totalorder %v727_v12, 8  ;;  %v814_v59 = vsel %vm362_vm2, 1.0, %v639_v3 }
  0x4b   :  { %v264_v60 = vadd.f32 %v263_v50, %v256_v42  ;;  %v316_v62 = vrot.slane %v315_v51, 2  ;;  %v342_v63 = vrot.slane %v341_v52, 4  ;;  %v817_v2 = vsel %vm363_vm3, 1.0, %v639_v3 }
  0x4c   :  { %v290_v4 = vrot.slane %v289_v56, 1  ;;  %v369_v5 = vadd.f32 %v817_v2, %v814_v59  ;;  %vm390_vm4 = vcmp.eq.s32.totalorder %v725_v22, 9  ;;  %vm391_vm5 = vcmp.eq.s32.totalorder %v727_v12, 9 }
  0x4d   :  { %265 = vst [vmem:[#allocation2 + $0x4] sm:$0x1] %v264_v60  ;;  %v317_v7 = vadd.f32 %v316_v62, %v315_v51  ;;  %v343_v8 = vadd.f32 %v342_v63, %v341_v52  ;;  %v584_v9 = vsel %vm390_vm4, 1.0, %v639_v3  ;;  %v585_v11 = vsel %vm391_vm5, 1.0, %v639_v3  ;;  %v26_v60 = vld [vmem:[%s947_s0 + $0x8] sm:$0x3] }
  0x4e   :  { %v291_v13 = vadd.f32 %v290_v4, %v289_v56  ;;  %v370_v15 = vrot.slane %v369_v5, 4  ;;  %v397_v16 = vadd.f32 %v585_v11, %v584_v9  ;;  %vm425_vm6 = vcmask 1041408   ;;  %v436_v56 = vld [vmem:[%s947_s0] sm:$0xff]  ;;  %v437_v63 = vld [vmem:[%s947_s0 + $0x8] sm:$0x3] }
  0x4f   :  { %v318_v17 = vrot.slane %v317_v7, 1  ;;  %v344_v0 = vrot.slane %v343_v8, 2  ;;  %vm27_vm7 = vcmask 7168   ;;  %vm29_vm8 = vcmask 1024  }
  0x50   :  { %v292_v19 = vadd.f32 %v291_v13, %v284_v6  ;;  %v371_v20 = vadd.f32 %v370_v15, %v369_v5  ;;  %v398_v21 = vrot.slane %v397_v16, 4  ;;  %28 = vst.msk [vmem:[%s951_s4] sm:$0xff] %vm27_vm7, %v436_v56  ;;  %v440_v62 = vmul.f32 0.1, %v436_v56 }
  0x51   :  { %v319_v22 = vadd.f32 %v318_v17, %v317_v7  ;;  %v345_v14 = vadd.f32 %v344_v0, %v343_v8  ;;  %30 = vst.msk [vmem:[%s951_s4 + $0x8] sm:$0x3] %vm29_vm8, %v26_v60  ;;  %v441_v6 = vmul.f32 0.1, %v437_v63  ;;  %v379_v15 = vmul.f32 %v814_v59, %v713_v54 }
  0x52   :  { %293 = vst [vmem:[#allocation2 + $0x5] sm:$0x1] %v292_v19  ;;  %v372_v12 = vrot.slane %v371_v20, 2  ;;  %v399_v23 = vadd.f32 %v398_v21, %v397_v16  ;;  %v380_v16 = vmul.f32 %v817_v2, %v716_v57  ;;  %v407_v17 = vmul.f32 %v584_v9, %v713_v54 }
  0x53   :  { %v320_v24 = vadd.f32 %v319_v22, %v312_v1  ;;  %v346_v26 = vrot.slane %v345_v14, 1  ;;  %v408_v0 = vmul.f32 %v585_v11, %v716_v57  ;;  %v157_v19 = vadd.f32 %v745_v29, %v738_v25 }
  0x54   :  { %v373_v30 = vadd.f32 %v372_v12, %v371_v20  ;;  %v400_v32 = vrot.slane %v399_v23, 2  ;;  %v185_v1 = vadd.f32 %v748_v31, %v742_v27  ;;  %v381_v21 = vadd.f32 %v380_v16, %v379_v15  ;;  %v210_v15 = vld [vmem:[#allocation3 + $0x2] sm:$0x1] }
  0x55   :  { %321 = vst [vmem:[#allocation2 + $0x6] sm:$0x1] %v320_v24  ;;  %v347_v33 = vadd.f32 %v346_v26, %v345_v14  ;;  %v213_v59 = vadd.f32 %v759_v38, %v756_v36  ;;  %v241_v2 = vadd.f32 %v767_v46, %v764_v44  ;;  %v409_v54 = vadd.f32 %v408_v0, %v407_v17  ;;  %v406_v0 = vld [vmem:[#allocation3 + $0x9] sm:$0x1] }
  0x56   :  { %v374_v34 = vrot.slane %v373_v30, 1  ;;  %v401_v37 = vadd.f32 %v400_v32, %v399_v23  ;;  %v158_v57 = vrot.slane %v157_v19, 4  ;;  %v186_v25 = vrot.slane %v185_v1, 4 }
  0x57   :  { %v348_v39 = vadd.f32 %v347_v33, %v340_v28  ;;  %v382_v27 = vrot.slane %v381_v21, 4  ;;  %v214_v29 = vrot.slane %v213_v59, 4  ;;  %v242_v31 = vrot.slane %v241_v2, 4 }
  0x58   :  { %v375_v42 = vadd.f32 %v374_v34, %v373_v30  ;;  %v402_v43 = vrot.slane %v401_v37, 1  ;;  %v269_v9 = vadd.f32 %v778_v61, %v774_v53  ;;  %v410_v38 = vrot.slane %v409_v54, 4 }
  0x59   :  { %349 = vst [vmem:[#allocation2 + $0x7] sm:$0x1] %v348_v39  ;;  %v159_v44 = vadd.f32 %v158_v57, %v157_v19  ;;  %v187_v46 = vadd.f32 %v186_v25, %v185_v1  ;;  %v383_v14 = vadd.f32 %v382_v27, %v381_v21  ;;  %v215_v12 = vadd.f32 %v214_v29, %v213_v59 }
  0x5a   :  { %v376_v47 = vadd.f32 %v375_v42, %v368_v41  ;;  %v403_v48 = vadd.f32 %v402_v43, %v401_v37  ;;  %v411_v24 = vadd.f32 %v410_v38, %v409_v54  ;;  %v297_v27 = vadd.f32 %v788_v18, %v784_v10 }
  0x5b   :  { %v160_v26 = vrot.slane %v159_v44, 2  ;;  %v188_v53 = vrot.slane %v187_v46, 2  ;;  %v384_v30 = vrot.slane %v383_v14, 2  ;;  %v216_v32 = vrot.slane %v215_v12, 2 }
  0x5c   :  { %377 = vst [vmem:[#allocation2 + $0x8] sm:$0x1] %v376_v47  ;;  %v404_v49 = vadd.f32 %v403_v48, %v396_v45  ;;  %v412_v34 = vrot.slane %v411_v24, 2  ;;  %v243_v45 = vadd.f32 %v242_v31, %v241_v2  ;;  %v238_v31 = vld [vmem:[#allocation3 + $0x3] sm:$0x1]  ;;  %v325_v38 = vadd.f32 %v799_v40, %v796_v35 }
  0x5d   :  { %v161_v37 = vadd.f32 %v160_v26, %v159_v44  ;;  %v189_v39 = vadd.f32 %v188_v53, %v187_v46  ;;  %v385_v42 = vadd.f32 %v384_v30, %v383_v14  ;;  %v217_v43 = vadd.f32 %v216_v32, %v215_v12 }
  0x5e   :  { %405 = vst [vmem:[#allocation2 + $0x9] sm:$0x1] %v404_v49  ;;  %v413_v48 = vadd.f32 %v412_v34, %v411_v24  ;;  %v244_v60 = vrot.slane %v243_v45, 2  ;;  %v353_v44 = vadd.f32 %v810_v58, %v807_v55  ;;  %v298_v10 = vrot.slane %v297_v27, 4 }
  0x5f   :  { %v162_v49 = vrot.slane %v161_v37, 1  ;;  %v326_v35 = vrot.slane %v325_v38, 4 }
  0x60   :  { %v421_v50 = vld [vmem:[#allocation2] sm:$0xff]  ;;  %v245_v1 = vadd.f32 %v244_v60, %v243_v45  ;;  %v354_v40 = vrot.slane %v353_v44, 4  ;;  %v299_v24 = vadd.f32 %v298_v10, %v297_v27 }
  0x61   :  { %423 = vadd.xlane.f32.xlu0 %v421_v50  ;;  %v190_v50 = vrot.slane %v189_v39, 1 }
  0x62   :  { %v246_v57 = vrot.slane %v245_v1, 1  ;;  %v300_v32 = vrot.slane %v299_v24, 2 }
  0x65   :  { %v422_v51 = vld [vmem:[#allocation2 + $0x8] sm:$0x3] }
  0x66   :  { %v426_v52 = vsel %vm425_vm6, %v422_v51, 0.0  ;;  %v378_v51 = vld [vmem:[#allocation3 + $0x8] sm:$0x1] }
  0x69   :  { %427 = vadd.xlane.f32.xlu0 %v426_v52  ;;  %v386_v52 = vrot.slane %v385_v42, 1 }
  0xd4   :  { %v843_v4 = vpop.xlane.xlu0 %423 }
  0xd5   :  { %vm438_vm9 = vcmp.gt.f32.partialorder %v843_v4, 0.0  ;;  %v442_v5 = vmul.f32 0.9, %v843_v4 }
  0xd6   :  { %v586_v7 = vsel %vm438_vm9, 1.0, %v639_v3 }
  0xd7   :  { %v444_v8 = vadd.f32 %v442_v5, %v440_v62  ;;  %v487_v13 = vsel %vm27_vm7, %v586_v7, 0.0  ;;  %v154_v62 = vld [vmem:[#allocation3] sm:$0x1]  ;;  %v270_v5 = vrot.slane %v269_v9, 4  ;;  %v414_v7 = vrot.slane %v413_v48, 1 }
  0xd9   :  { %v446_v20 = vsel %vm438_vm9, %v444_v8, %v436_v56  ;;  %v218_v56 = vrot.slane %v217_v43, 1  ;;  %v163_v8 = vadd.f32 %v162_v49, %v161_v37  ;;  %v415_v21 = vadd.f32 %v414_v7, %v413_v48 }
  0xda   :  { %v867_v22 = vmax.f32 %v446_v20, 1e-12  ;;  %518 = vst.msk [vmem:[%s951_s4] sm:$0xff] %vm27_vm7, %v446_v20  ;;  %v271_v25 = vadd.f32 %v270_v5, %v269_v9  ;;  %v247_v9 = vadd.f32 %v246_v57, %v245_v1  ;;  %v301_v48 = vadd.f32 %v300_v32, %v299_v24 }
  0xdb   :  { %v219_v19 = vadd.f32 %v218_v56, %v217_v43  ;;  %v164_v59 = vadd.f32 %v163_v8, %v154_v62  ;;  %v416_v29 = vadd.f32 %v415_v21, %v406_v0  ;;  %v322_v0 = vld [vmem:[#allocation3 + $0x6] sm:$0x1] }
  0xdc   :  { %617 = vrcp.f32 %v867_v22  ;;  %v876_v36 = vpop.xlane.xlu0 %427  ;;  %v272_v12 = vrot.slane %v271_v25, 2  ;;  %v248_v55 = vadd.f32 %v247_v9, %v238_v31  ;;  %v459_v34 = vand.u32 2147483647, %v867_v22 }
  0xdd   :  { %vm439_vm10 = vcmp.gt.f32.partialorder %v876_v36, 0.0  ;;  %v443_v11 = vmul.f32 0.9, %v876_v36  ;;  %v220_v54 = vadd.f32 %v219_v19, %v210_v15  ;;  %165 = vst [vmem:[#allocation3] sm:$0x1] %v164_v59  ;;  %v461_v43 = vand.u32 2147483648, %v867_v22 }
  0xde   :  { %v587_v23 = vsel %vm439_vm10, 1.0, %v639_v3  ;;  %417 = vst [vmem:[#allocation3 + $0x9] sm:$0x1] %v416_v29  ;;  %v273_v58 = vadd.f32 %v272_v12, %v271_v25  ;;  %vm455_vm15 = vweird.f32 %v867_v22  ;;  %vm923_vm1 = vcmp.eq.f32.partialorder %v459_v34, 8.507059e+37  ;;  %v350_v19 = vld [vmem:[#allocation3 + $0x7] sm:$0x1] }
  0xdf   :  { %v445_v61 = vadd.f32 %v443_v11, %v441_v6  ;;  %v489_v28 = vsel %vm29_vm8, %v587_v23, 0.0  ;;  %v387_v6 = vadd.f32 %v386_v52, %v385_v42  ;;  %221 = vst [vmem:[#allocation3 + $0x2] sm:$0x1] %v220_v54 }
  0xe0   :  { %v490_v33 = vadd.f32 %v489_v28, %v487_v13  ;;  %v191_v13 = vadd.f32 %v190_v50, %v189_v39  ;;  %v355_v28 = vadd.f32 %v354_v40, %v353_v44  ;;  %249 = vst [vmem:[#allocation3 + $0x3] sm:$0x1] %v248_v55  ;;  %v274_v30 = vrot.slane %v273_v58, 1  ;;  %v266_v39 = vld [vmem:[#allocation3 + $0x4] sm:$0x1] }
  0xe1   :  { %v447_v41 = vsel %vm439_vm10, %v445_v61, %v437_v63  ;;  %v182_v63 = vld [vmem:[#allocation3 + $0x1] sm:$0x1]  ;;  %v388_v20 = vadd.f32 %v387_v6, %v378_v51  ;;  %v327_v61 = vadd.f32 %v326_v35, %v325_v38  ;;  %v462_v6 = vor.u32 1.1754944e-38, %v461_v43 }
  0xe2   :  { %v886_v47 = vpop.eup %617  ;;  %v888_v3 = vmax.f32 %v447_v41, 1e-12  ;;  %519 = vst.msk [vmem:[%s951_s4 + $0x8] sm:$0x3] %vm29_vm8, %v447_v41  ;;  %491 = vadd.xlane.f32.xlu1 %v490_v33  ;;  %v192_v2 = vadd.f32 %v191_v13, %v182_v63  ;;  %v356_v42 = vrot.slane %v355_v28, 2  ;;  %v275_v45 = vadd.f32 %v274_v30, %v273_v58 }
  0xe3   :  { %389 = vst [vmem:[#allocation3 + $0x8] sm:$0x1] %v388_v20  ;;  %v451_v46 = vmul.f32 %v886_v47, %v867_v22  ;;  %vm456_vm14 = vweird.f32 %v886_v47  ;;  %v328_v41 = vrot.slane %v327_v61, 2  ;;  %v302_v22 = vrot.slane %v301_v48, 1  ;;  %v294_v13 = vld [vmem:[#allocation3 + $0x5] sm:$0x1] }
  0xe4   :  { %619 = vrcp.f32 %v888_v3  ;;  %v474_v16 = vand.u32 2147483647, %v888_v3  ;;  %v476_v17 = vand.u32 2147483648, %v888_v3  ;;  %vm470_vm11 = vweird.f32 %v888_v3  ;;  %193 = vst [vmem:[#allocation3 + $0x1] sm:$0x1] %v192_v2  ;;  %vm919_vm0 = vmor %vm455_vm15, %vm456_vm14 }
  0xe5   :  { %v452_v26 = vsub.f32 1.0, %v451_v46  ;;  %v329_v51 = vadd.f32 %v328_v41, %v327_v61  ;;  %v357_v52 = vadd.f32 %v356_v42, %v355_v28  ;;  %v276_v63 = vadd.f32 %v275_v45, %v266_v39 }
  0xe6   :  { %v477_v14 = vor.u32 1.1754944e-38, %v476_v17  ;;  %vm907_vm13 = vcmp.eq.f32.partialorder %v474_v16, 8.507059e+37  ;;  %v642_v39 = vmov 128.0  }
  0xe7   :  { %v453_v33 = vmul.f32 %v886_v47, %v452_v26  ;;  %v330_v15 = vrot.slane %v329_v51, 1  ;;  %v358_v16 = vrot.slane %v357_v52, 1  ;;  %277 = vst [vmem:[#allocation3 + $0x4] sm:$0x1] %v276_v63 }
  0xe9   :  { %v454_v49 = vadd.f32 %v886_v47, %v453_v33  ;;  %v359_v21 = vadd.f32 %v358_v16, %v357_v52 }
  0xea   :  { %v620_v11 = vpop.eup %619  ;;  %v430_v62 = vld [vmem:[#allocation3 + $0x8] sm:$0x3] }
  0xeb   :  { %v466_v18 = vmul.f32 %v620_v11, %v888_v3  ;;  %vm471_vm12 = vweird.f32 %v620_v11  ;;  %v458_v5 = vsel %vm919_vm0, %v886_v47, %v454_v49  ;;  %v433_v8 = vsel %vm425_vm6, %v430_v62, 0.0 }
  0xec   :  { %vm472_vm2 = vmor %vm470_vm11, %vm471_vm12  ;;  %434 = vadd.xlane.f32.xlu2 %v433_v8  ;;  %v303_v3 = vadd.f32 %v302_v22, %v301_v48  ;;  %v463_v1 = vsel %vm923_vm1, %v462_v6, %v458_v5  ;;  %v331_v47 = vadd.f32 %v330_v15, %v329_v51  ;;  %v360_v25 = vadd.f32 %v359_v21, %v350_v19 }
  0xed   :  { %v467_v53 = vsub.f32 1.0, %v466_v18  ;;  %v464_v59 = vmul.f32 128.0, %v463_v1 }
  0xee   :  { %v304_v2 = vadd.f32 %v303_v3, %v294_v13  ;;  %v332_v57 = vadd.f32 %v331_v47, %v322_v0  ;;  %361 = vst [vmem:[#allocation3 + $0x7] sm:$0x1] %v360_v25 }
  0xef   :  { %v468_v37 = vmul.f32 %v620_v11, %v467_v53  ;;  %v480_v27 = vsel %vm438_vm9, %v464_v59, 0.0 }
  0xf0   :  { %305 = vst [vmem:[#allocation3 + $0x5] sm:$0x1] %v304_v2 }
  0xf1   :  { %v469_v50 = vadd.f32 %v620_v11, %v468_v37  ;;  %333 = vst [vmem:[#allocation3 + $0x6] sm:$0x1] %v332_v57 }
  0xf3   :  { %v473_v7 = vsel %vm472_vm2, %v620_v11, %v469_v50 }
  0xf4   :  { %v478_v17 = vsel %vm907_vm13, %v477_v14, %v473_v7 }
  0xf5   :  { %v479_v20 = vmul.f32 128.0, %v478_v17 }
  0xf7   :  { %v481_v54 = vsel %vm439_vm10, %v479_v20, 0.0 }
  0xf8   :  { %v429_v29 = vld [vmem:[#allocation3] sm:$0xff] }
  0xf9   :  { %431 = vadd.xlane.f32.xlu1 %v429_v29 }
 0x155   :  { %v492_v31 = vpop.xlane.xlu1 %491 }
 0x156   :  { %v493_v38 = vrot.slane %v492_v31, 4 }
 0x158   :  { %v494_v44 = vadd.f32 %v493_v38, %v492_v31 }
 0x15a   :  { %v495_v46 = vrot.slane %v494_v44, 2 }
 0x15c   :  { %v496_v11 = vadd.f32 %v495_v46, %v494_v44 }
 0x15e   :  { %v497_v14 = vrot.slane %v496_v11, 1 }
 0x15f   :  { %v435_v24 = vpop.xlane.xlu2 %434 }
 0x160   :  { %v498_v9 = vadd.f32 %v497_v14, %v496_v11 }
 0x162   :  { %592 = vpush %v498_v9 }
 0x16c   :  { %v432_v53 = vpop.xlane.xlu1 %431 }
 0x193   :  { %s593_s4 = spop %592 }
 0x194   :  { %s500_s9 = smax.f32 %s641_s8, %s593_s4 }
 0x195   :  { %v501_v36 = vstv %s500_s9 }
 0x196   :  { %621 = vrcp.f32 %v501_v36  ;;  %v513_v18 = vand.u32 2147483648, %v501_v36  ;;  %v511_v35 = vand.u32 2147483647, %v501_v36  ;;  %vm507_vm4 = vweird.f32 %v501_v36 }
 0x197   :  { %623 = vrcp.f32 %v642_v39 }
 0x198   :  { %v514_v55 = vor.u32 1.1754944e-38, %v513_v18  ;;  %vm512_vm6 = vcmp.eq.f32.partialorder %v511_v35, 8.507059e+37 }
 0x19c   :  { %v622_v4 = vpop.eup %621 }
 0x19d   :  { %v503_v12 = vmul.f32 %v622_v4, %v501_v36  ;;  %vm508_vm3 = vweird.f32 %v622_v4  ;;  %v624_v41 = vpop.eup %623 }
 0x19e   :  { %vm509_vm5 = vmor %vm507_vm4, %vm508_vm3  ;;  %v535_v42 = vmul.f32 128.0, %v624_v41  ;;  %vm539_vm9 = vweird.f32 %v624_v41 }
 0x19f   :  { %v504_v10 = vsub.f32 1.0, %v503_v12 }
 0x1a0   :  { %v536_v43 = vsub.f32 1.0, %v535_v42 }
 0x1a1   :  { %v505_v23 = vmul.f32 %v622_v4, %v504_v10 }
 0x1a2   :  { %v537_v50 = vmul.f32 %v624_v41, %v536_v43 }
 0x1a3   :  { %v506_v40 = vadd.f32 %v622_v4, %v505_v23 }
 0x1a4   :  { %v538_v56 = vadd.f32 %v624_v41, %v537_v50 }
 0x1a5   :  { %v510_v58 = vsel %vm509_vm5, %v622_v4, %v506_v40 }
 0x1a6   :  { %v515_v26 = vsel %vm512_vm6, %v514_v55, %v510_v58  ;;  %v540_v63 = vsel %vm539_vm9, %v624_v41, %v538_v56 }
 0x1a7   :  { %v517_v61 = vmul.f32 %v515_v26, %v481_v54  ;;  %v516_v28 = vmul.f32 %v515_v26, %v480_v27 }
 0x1a9   :  { %v521_v30 = vmul.f32 %v517_v61, %v435_v24  ;;  %v520_v32 = vmul.f32 %v516_v28, %v432_v53 }
 0x1ab   :  { %v522_v33 = vsel %vm27_vm7, %v520_v32, 0.0  ;;  %v523_v34 = vsel %vm29_vm8, %v521_v30, 0.0 }
 0x1ac   :  { %v524_v37 = vadd.f32 %v523_v34, %v522_v33 }
 0x1ae   :  { %525 = vadd.xlane.f32.xlu2 %v524_v37 }
 0x221   :  { %v526_v45 = vpop.xlane.xlu2 %525 }
 0x222   :  { %v527_v48 = vrot.slane %v526_v45, 4 }
 0x224   :  { %v528_v49 = vadd.f32 %v527_v48, %v526_v45 }
 0x226   :  { %v529_v51 = vrot.slane %v528_v49, 2 }
 0x228   :  { %v530_v52 = vadd.f32 %v529_v51, %v528_v49 }
 0x22a   :  { %v531_v60 = vrot.slane %v530_v52, 1 }
 0x22c   :  { %v532_v62 = vadd.f32 %v531_v60, %v530_v52 }
 0x22e   :  { %594 = vpush %v532_v62 }
 0x22f   :  { %596 = vpush %v540_v63 }
 0x25f   :  { %s595_s13 = spop %594 }
 0x260   :  { %s597_s14 = spop %596 }
 0x261   :  { %s542_s15 = smul.f32 %s597_s14, %s595_s13 }
 0x263   :  { %544 = sst [smem:[#allocation4]] %s542_s15 }
 0x264   :  { %553 = dma.smem_to_hbm %s643_s16, 16, %s551_s12, [#allocation5]  }
 0x265   :  { %637 = dma.done.wait [#allocation5], 16  }
 0x266   :  { %638 = vsyncadd [#allocation5], 4294967280 }
 0x267   :  { %562 = sfence }
 0x268   :  { %563 = vsyncpa [#allocation5], 1 }

</bundles_post_ra>
